<compile_context>
chip_gen: v7x
topology: tpu7x:2x2x1
jax: 0.10.0
libtpu: 0.0.40
codegen_flags: <defaults>
</compile_context>

<pallas_src>
import jax
import jax.numpy as jnp
from jax.experimental import pallas as pl
from jax.experimental.pallas import tpu as pltpu


def lstm_fc_kernel(xw_ref, w_hh_ref, fc_w_ref, fc_b_ref, out_ref):
    """Single invocation: full LSTM recurrence + final Linear.

    xw_ref   : (T, B, 4H) f32   precomputed x@W_ih^T + (b_ih+b_hh), g-cols pre-scaled by 2
    w_hh_ref : (H, 4H)   bf16   W_hh^T, g-cols pre-scaled by 2
    fc_w_ref : (H, C)    f32    fc weight, transposed
    fc_b_ref : (1, C)    f32    fc bias
    out_ref  : (B, C)    f32
    """
    T, B, _ = xw_ref.shape
    H = w_hh_ref.shape[0]

    w_hh = w_hh_ref[...]                      # (H, 4H) bf16, stays resident

    h = jnp.zeros((B, H), jnp.float32)
    c = jnp.zeros((B, H), jnp.float32)

    # Static trip count (T=8): fully unrolled at trace time.
    for t in range(T):
        # Leading-dim index -> whole (B, 4H) tile, no relayout copies.
        gates = xw_ref[t] + jnp.dot(h.astype(jnp.bfloat16), w_hh,
                                    preferred_element_type=jnp.float32)

        # Single full-width EUP push; tanh(z) = 2*sigmoid(2z) - 1 with the 2x
        # scaling already folded into the g-gate weight/bias columns.
        sig = jax.nn.sigmoid(gates)
        i_g = sig[:, 0 * H:1 * H]
        f_g = sig[:, 1 * H:2 * H]
        g_g = 2.0 * sig[:, 2 * H:3 * H] - 1.0
        o_g = sig[:, 3 * H:4 * H]

        c = f_g * c + i_g * g_g
        h = o_g * (2.0 * jax.nn.sigmoid(2.0 * c) - 1.0)   # tanh(c) via sigmoid

    # dropout(p=0.5) is identity in eval mode (inference semantics).
    out_ref[...] = (jnp.dot(h, fc_w_ref[...], preferred_element_type=jnp.float32)
                    + fc_b_ref[...])


def prepare_params(params):
    """One-time host-side packing of the PyTorch-layout parameters."""
    H = params["w_hh"].shape[1]
    # PyTorch gate order [i, f, g, o]; pre-scale the g block by 2 so that
    # tanh(z) = 2*sigmoid(2z) - 1 needs only one sigmoid in-kernel.
    scale = jnp.concatenate(
        [jnp.ones((2 * H,)), 2.0 * jnp.ones((H,)), jnp.ones((H,))]
    ).astype(jnp.float32)

    w_ih_t = params["w_ih"].T.astype(jnp.float32) * scale[None, :]          # (I, 4H)
    w_hh_t = (params["w_hh"].T.astype(jnp.float32)
              * scale[None, :]).astype(jnp.bfloat16)                        # (H, 4H) bf16
    bias = ((params["b_ih"] + params["b_hh"]).astype(jnp.float32)
            * scale).reshape(1, 4 * H)                                       # (1, 4H)
    fc_w_t = params["fc_w"].T.astype(jnp.float32)                            # (H, C)
    fc_b = params["fc_b"].reshape(1, -1).astype(jnp.float32)                 # (1, C)
    return {"w_ih_t": w_ih_t, "w_hh_t": w_hh_t, "bias": bias,
            "fc_w_t": fc_w_t, "fc_b": fc_b}


@jax.jit
def gesture_lstm_forward(x, prepped):
    """x: (B, T, I) float32 (batch_first, same as PyTorch). Returns (B, C) float32."""
    B, T, I = x.shape
    H, C = prepped["fc_w_t"].shape
    G = 4 * H

    # Input projection + bias for ALL timesteps at once (off the h->h critical path),
    # laid out as (T, B, 4H) so the kernel's per-step access is a leading-dim index.
    xw = (jnp.einsum("bti,ig->tbg", x.astype(jnp.float32), prepped["w_ih_t"])
          + prepped["bias"][None, :, :])                                     # (T, B, 4H)

    return pl.pallas_call(
        lstm_fc_kernel,
        out_shape=jax.ShapeDtypeStruct((B, C), jnp.float32),
        grid=(1,),
        in_specs=[
            pl.BlockSpec((T, B, G), lambda i: (0, 0, 0)),    # precomputed gate inputs
            pl.BlockSpec((H, G), lambda i: (0, 0)),          # W_hh^T (bf16)
            pl.BlockSpec((H, C), lambda i: (0, 0)),          # fc W^T
            pl.BlockSpec((1, C), lambda i: (0, 0)),          # fc b
        ],
        out_specs=pl.BlockSpec((B, C), lambda i: (0, 0)),
        compiler_params=pltpu.CompilerParams(
            dimension_semantics=("arbitrary",)),
    )(xw, prepped["w_hh_t"], prepped["fc_w_t"], prepped["fc_b"])


def _reference_forward(x, params):
    """Pure-JAX f32 reference mirroring torch.nn.LSTM + Linear (eval mode)."""
    B, T, I = x.shape
    H = params["w_hh"].shape[1]
    h = jnp.zeros((B, H), jnp.float32)
    c = jnp.zeros((B, H), jnp.float32)
    w_ih_t = params["w_ih"].T
    w_hh_t = params["w_hh"].T
    b = params["b_ih"] + params["b_hh"]
    for t in range(T):
        gates = x[:, t, :] @ w_ih_t + h @ w_hh_t + b
        i_g = jax.nn.sigmoid(gates[:, 0 * H:1 * H])
        f_g = jax.nn.sigmoid(gates[:, 1 * H:2 * H])
        g_g = jnp.tanh(gates[:, 2 * H:3 * H])
        o_g = jax.nn.sigmoid(gates[:, 3 * H:4 * H])
        c = f_g * c + i_g * g_g
        h = o_g * jnp.tanh(c)
    return h @ params["fc_w"].T + params["fc_b"]


def init_params(key, input_size, hidden_size, num_classes):
    ks = jax.random.split(key, 6)
    k_lstm = 1.0 / jnp.sqrt(hidden_size)
    k_fc = 1.0 / jnp.sqrt(hidden_size)
    u = lambda k, shape, bound: jax.random.uniform(
        k, shape, jnp.float32, -bound, bound)
    return {
        "w_ih": u(ks[0], (4 * hidden_size, input_size), k_lstm),
        "w_hh": u(ks[1], (4 * hidden_size, hidden_size), k_lstm),
        "b_ih": u(ks[2], (4 * hidden_size,), k_lstm),
        "b_hh": u(ks[3], (4 * hidden_size,), k_lstm),
        "fc_w": u(ks[4], (num_classes, hidden_size), k_fc),
        "fc_b": u(ks[5], (num_classes,), k_fc),
    }


if __name__ == "__main__":
    B, T, INPUT, HIDDEN, CLASSES = 2, 8, 16, 32, 4

    key = jax.random.PRNGKey(0)
    k_x, k_p = jax.random.split(key)
    x = jax.random.normal(k_x, (B, T, INPUT), jnp.float32)
    params = init_params(k_p, INPUT, HIDDEN, CLASSES)

    prepped = prepare_params(params)          # one-time weight packing
    out = gesture_lstm_forward(x, prepped)
    out = jax.block_until_ready(out)

    ref = _reference_forward(x, params)
    assert out.shape == (B, CLASSES)
    # Tolerance relaxed vs. pure-f32: the recurrent matmul runs with bf16 operands.
    assert jnp.allclose(out, ref, atol=1e-2, rtol=1e-2), (out, ref)

    print("KERNEL_OK")
</pallas_src>

<mosaic_0001>
module attributes {stable_mosaic.version = 11 : i64} {
  func.func @lstm_fc_kernel(%arg0: i32, %arg1: memref<8x2x128xf32, #tpu.memory_space<vmem>>, %arg2: memref<32x128xbf16, #tpu.memory_space<vmem>>, %arg3: memref<32x4xf32, #tpu.memory_space<vmem>>, %arg4: memref<1x4xf32, #tpu.memory_space<vmem>>, %arg5: memref<2x4xf32, #tpu.memory_space<vmem>>) attributes {dimension_semantics = [#tpu.dimension_semantics<arbitrary>], iteration_bounds = array<i64: 1>, scalar_prefetch = 0 : i64, scratch_operands = 0 : i64, tpu.core_type = #tpu.core_type<tc>, window_params = [{pipeline_mode = #tpu.pipeline_mode<synchronous>, transform_indices = @transform_0, window_bounds = array<i64: 8, 2, 128>}, {pipeline_mode = #tpu.pipeline_mode<synchronous>, transform_indices = @transform_1, window_bounds = array<i64: 32, 128>}, {pipeline_mode = #tpu.pipeline_mode<synchronous>, transform_indices = @transform_2, window_bounds = array<i64: 32, 4>}, {pipeline_mode = #tpu.pipeline_mode<synchronous>, transform_indices = @transform_3, window_bounds = array<i64: 1, 4>}, {pipeline_mode = #tpu.pipeline_mode<synchronous>, transform_indices = @transform_4, window_bounds = array<i64: 2, 4>}]} {
    %c0 = arith.constant 0 : index
    %c0_0 = arith.constant 0 : index
    %0 = vector.load %arg2[%c0, %c0_0] : memref<32x128xbf16, #tpu.memory_space<vmem>>, vector<32x128xbf16>
    %cst = arith.constant 0.000000e+00 : f32
    %1 = vector.broadcast %cst : f32 to vector<2x32xf32>
    %cst_1 = arith.constant 0.000000e+00 : f32
    %2 = vector.broadcast %cst_1 : f32 to vector<2x32xf32>
    %c0_2 = arith.constant 0 : index
    %c0_3 = arith.constant 0 : index
    %c0_4 = arith.constant 0 : index
    %3 = vector.load %arg1[%c0_2, %c0_3, %c0_4] : memref<8x2x128xf32, #tpu.memory_space<vmem>>, vector<1x2x128xf32>
    %4 = vector.shape_cast %3 : vector<1x2x128xf32> to vector<2x128xf32>
    %5 = arith.truncf %1 : vector<2x32xf32> to vector<2x32xbf16>
    %cst_5 = arith.constant dense<0.000000e+00> : vector<2x128xf32>
    %6 = tpu.matmul %5, %0, %cst_5 {dimension_numbers = #tpu.dot_dimension_numbers<[1], [0], [0], [1], [0, 0, 1, 1], [], []>} : vector<2x32xbf16>, vector<32x128xbf16>, vector<2x128xf32> -> vector<2x128xf32>
    %7 = arith.addf %4, %6 : vector<2x128xf32>
    %8 = arith.negf %7 : vector<2x128xf32>
    %9 = math.exp %8 : vector<2x128xf32>
    %cst_6 = arith.constant 1.000000e+00 : f32
    %10 = vector.broadcast %cst_6 : f32 to vector<2x128xf32>
    %11 = arith.addf %10, %9 : vector<2x128xf32>
    %12 = arith.divf %10, %11 : vector<2x128xf32>
    %13 = vector.extract_strided_slice %12 {offsets = [0, 0], sizes = [2, 32], strides = [1, 1]} : vector<2x128xf32> to vector<2x32xf32>
    %14 = vector.extract_strided_slice %12 {offsets = [0, 32], sizes = [2, 32], strides = [1, 1]} : vector<2x128xf32> to vector<2x32xf32>
    %15 = vector.extract_strided_slice %12 {offsets = [0, 64], sizes = [2, 32], strides = [1, 1]} : vector<2x128xf32> to vector<2x32xf32>
    %cst_7 = arith.constant 2.000000e+00 : f32
    %16 = vector.broadcast %cst_7 : f32 to vector<2x32xf32>
    %17 = arith.mulf %16, %15 : vector<2x32xf32>
    %cst_8 = arith.constant 1.000000e+00 : f32
    %18 = vector.broadcast %cst_8 : f32 to vector<2x32xf32>
    %19 = arith.subf %17, %18 : vector<2x32xf32>
    %20 = vector.extract_strided_slice %12 {offsets = [0, 96], sizes = [2, 32], strides = [1, 1]} : vector<2x128xf32> to vector<2x32xf32>
    %21 = arith.mulf %14, %2 : vector<2x32xf32>
    %22 = arith.mulf %13, %19 : vector<2x32xf32>
    %23 = arith.addf %21, %22 : vector<2x32xf32>
    %cst_9 = arith.constant 2.000000e+00 : f32
    %24 = vector.broadcast %cst_9 : f32 to vector<2x32xf32>
    %25 = arith.mulf %24, %23 : vector<2x32xf32>
    %26 = arith.negf %25 : vector<2x32xf32>
    %27 = math.exp %26 : vector<2x32xf32>
    %cst_10 = arith.constant 1.000000e+00 : f32
    %28 = vector.broadcast %cst_10 : f32 to vector<2x32xf32>
    %29 = arith.addf %28, %27 : vector<2x32xf32>
    %30 = arith.divf %28, %29 : vector<2x32xf32>
    %cst_11 = arith.constant 2.000000e+00 : f32
    %31 = vector.broadcast %cst_11 : f32 to vector<2x32xf32>
    %32 = arith.mulf %31, %30 : vector<2x32xf32>
    %cst_12 = arith.constant 1.000000e+00 : f32
    %33 = vector.broadcast %cst_12 : f32 to vector<2x32xf32>
    %34 = arith.subf %32, %33 : vector<2x32xf32>
    %35 = arith.mulf %20, %34 : vector<2x32xf32>
    %c1 = arith.constant 1 : index
    %c0_13 = arith.constant 0 : index
    %c0_14 = arith.constant 0 : index
    %36 = vector.load %arg1[%c1, %c0_13, %c0_14] : memref<8x2x128xf32, #tpu.memory_space<vmem>>, vector<1x2x128xf32>
    %37 = vector.shape_cast %36 : vector<1x2x128xf32> to vector<2x128xf32>
    %38 = arith.truncf %35 : vector<2x32xf32> to vector<2x32xbf16>
    %cst_15 = arith.constant dense<0.000000e+00> : vector<2x128xf32>
    %39 = tpu.matmul %38, %0, %cst_15 {dimension_numbers = #tpu.dot_dimension_numbers<[1], [0], [0], [1], [0, 0, 1, 1], [], []>} : vector<2x32xbf16>, vector<32x128xbf16>, vector<2x128xf32> -> vector<2x128xf32>
    %40 = arith.addf %37, %39 : vector<2x128xf32>
    %41 = arith.negf %40 : vector<2x128xf32>
    %42 = math.exp %41 : vector<2x128xf32>
    %cst_16 = arith.constant 1.000000e+00 : f32
    %43 = vector.broadcast %cst_16 : f32 to vector<2x128xf32>
    %44 = arith.addf %43, %42 : vector<2x128xf32>
    %45 = arith.divf %43, %44 : vector<2x128xf32>
    %46 = vector.extract_strided_slice %45 {offsets = [0, 0], sizes = [2, 32], strides = [1, 1]} : vector<2x128xf32> to vector<2x32xf32>
    %47 = vector.extract_strided_slice %45 {offsets = [0, 32], sizes = [2, 32], strides = [1, 1]} : vector<2x128xf32> to vector<2x32xf32>
    %48 = vector.extract_strided_slice %45 {offsets = [0, 64], sizes = [2, 32], strides = [1, 1]} : vector<2x128xf32> to vector<2x32xf32>
    %cst_17 = arith.constant 2.000000e+00 : f32
    %49 = vector.broadcast %cst_17 : f32 to vector<2x32xf32>
    %50 = arith.mulf %49, %48 : vector<2x32xf32>
    %cst_18 = arith.constant 1.000000e+00 : f32
    %51 = vector.broadcast %cst_18 : f32 to vector<2x32xf32>
    %52 = arith.subf %50, %51 : vector<2x32xf32>
    %53 = vector.extract_strided_slice %45 {offsets = [0, 96], sizes = [2, 32], strides = [1, 1]} : vector<2x128xf32> to vector<2x32xf32>
    %54 = arith.mulf %47, %23 : vector<2x32xf32>
    %55 = arith.mulf %46, %52 : vector<2x32xf32>
    %56 = arith.addf %54, %55 : vector<2x32xf32>
    %cst_19 = arith.constant 2.000000e+00 : f32
    %57 = vector.broadcast %cst_19 : f32 to vector<2x32xf32>
    %58 = arith.mulf %57, %56 : vector<2x32xf32>
    %59 = arith.negf %58 : vector<2x32xf32>
    %60 = math.exp %59 : vector<2x32xf32>
    %cst_20 = arith.constant 1.000000e+00 : f32
    %61 = vector.broadcast %cst_20 : f32 to vector<2x32xf32>
    %62 = arith.addf %61, %60 : vector<2x32xf32>
    %63 = arith.divf %61, %62 : vector<2x32xf32>
    %cst_21 = arith.constant 2.000000e+00 : f32
    %64 = vector.broadcast %cst_21 : f32 to vector<2x32xf32>
    %65 = arith.mulf %64, %63 : vector<2x32xf32>
    %cst_22 = arith.constant 1.000000e+00 : f32
    %66 = vector.broadcast %cst_22 : f32 to vector<2x32xf32>
    %67 = arith.subf %65, %66 : vector<2x32xf32>
    %68 = arith.mulf %53, %67 : vector<2x32xf32>
    %c2 = arith.constant 2 : index
    %c0_23 = arith.constant 0 : index
    %c0_24 = arith.constant 0 : index
    %69 = vector.load %arg1[%c2, %c0_23, %c0_24] : memref<8x2x128xf32, #tpu.memory_space<vmem>>, vector<1x2x128xf32>
    %70 = vector.shape_cast %69 : vector<1x2x128xf32> to vector<2x128xf32>
    %71 = arith.truncf %68 : vector<2x32xf32> to vector<2x32xbf16>
    %cst_25 = arith.constant dense<0.000000e+00> : vector<2x128xf32>
    %72 = tpu.matmul %71, %0, %cst_25 {dimension_numbers = #tpu.dot_dimension_numbers<[1], [0], [0], [1], [0, 0, 1, 1], [], []>} : vector<2x32xbf16>, vector<32x128xbf16>, vector<2x128xf32> -> vector<2x128xf32>
    %73 = arith.addf %70, %72 : vector<2x128xf32>
    %74 = arith.negf %73 : vector<2x128xf32>
    %75 = math.exp %74 : vector<2x128xf32>
    %cst_26 = arith.constant 1.000000e+00 : f32
    %76 = vector.broadcast %cst_26 : f32 to vector<2x128xf32>
    %77 = arith.addf %76, %75 : vector<2x128xf32>
    %78 = arith.divf %76, %77 : vector<2x128xf32>
    %79 = vector.extract_strided_slice %78 {offsets = [0, 0], sizes = [2, 32], strides = [1, 1]} : vector<2x128xf32> to vector<2x32xf32>
    %80 = vector.extract_strided_slice %78 {offsets = [0, 32], sizes = [2, 32], strides = [1, 1]} : vector<2x128xf32> to vector<2x32xf32>
    %81 = vector.extract_strided_slice %78 {offsets = [0, 64], sizes = [2, 32], strides = [1, 1]} : vector<2x128xf32> to vector<2x32xf32>
    %cst_27 = arith.constant 2.000000e+00 : f32
    %82 = vector.broadcast %cst_27 : f32 to vector<2x32xf32>
    %83 = arith.mulf %82, %81 : vector<2x32xf32>
    %cst_28 = arith.constant 1.000000e+00 : f32
    %84 = vector.broadcast %cst_28 : f32 to vector<2x32xf32>
    %85 = arith.subf %83, %84 : vector<2x32xf32>
    %86 = vector.extract_strided_slice %78 {offsets = [0, 96], sizes = [2, 32], strides = [1, 1]} : vector<2x128xf32> to vector<2x32xf32>
    %87 = arith.mulf %80, %56 : vector<2x32xf32>
    %88 = arith.mulf %79, %85 : vector<2x32xf32>
    %89 = arith.addf %87, %88 : vector<2x32xf32>
    %cst_29 = arith.constant 2.000000e+00 : f32
    %90 = vector.broadcast %cst_29 : f32 to vector<2x32xf32>
    %91 = arith.mulf %90, %89 : vector<2x32xf32>
    %92 = arith.negf %91 : vector<2x32xf32>
    %93 = math.exp %92 : vector<2x32xf32>
    %cst_30 = arith.constant 1.000000e+00 : f32
    %94 = vector.broadcast %cst_30 : f32 to vector<2x32xf32>
    %95 = arith.addf %94, %93 : vector<2x32xf32>
    %96 = arith.divf %94, %95 : vector<2x32xf32>
    %cst_31 = arith.constant 2.000000e+00 : f32
    %97 = vector.broadcast %cst_31 : f32 to vector<2x32xf32>
    %98 = arith.mulf %97, %96 : vector<2x32xf32>
    %cst_32 = arith.constant 1.000000e+00 : f32
    %99 = vector.broadcast %cst_32 : f32 to vector<2x32xf32>
    %100 = arith.subf %98, %99 : vector<2x32xf32>
    %101 = arith.mulf %86, %100 : vector<2x32xf32>
    %c3 = arith.constant 3 : index
    %c0_33 = arith.constant 0 : index
    %c0_34 = arith.constant 0 : index
    %102 = vector.load %arg1[%c3, %c0_33, %c0_34] : memref<8x2x128xf32, #tpu.memory_space<vmem>>, vector<1x2x128xf32>
    %103 = vector.shape_cast %102 : vector<1x2x128xf32> to vector<2x128xf32>
    %104 = arith.truncf %101 : vector<2x32xf32> to vector<2x32xbf16>
    %cst_35 = arith.constant dense<0.000000e+00> : vector<2x128xf32>
    %105 = tpu.matmul %104, %0, %cst_35 {dimension_numbers = #tpu.dot_dimension_numbers<[1], [0], [0], [1], [0, 0, 1, 1], [], []>} : vector<2x32xbf16>, vector<32x128xbf16>, vector<2x128xf32> -> vector<2x128xf32>
    %106 = arith.addf %103, %105 : vector<2x128xf32>
    %107 = arith.negf %106 : vector<2x128xf32>
    %108 = math.exp %107 : vector<2x128xf32>
    %cst_36 = arith.constant 1.000000e+00 : f32
    %109 = vector.broadcast %cst_36 : f32 to vector<2x128xf32>
    %110 = arith.addf %109, %108 : vector<2x128xf32>
    %111 = arith.divf %109, %110 : vector<2x128xf32>
    %112 = vector.extract_strided_slice %111 {offsets = [0, 0], sizes = [2, 32], strides = [1, 1]} : vector<2x128xf32> to vector<2x32xf32>
    %113 = vector.extract_strided_slice %111 {offsets = [0, 32], sizes = [2, 32], strides = [1, 1]} : vector<2x128xf32> to vector<2x32xf32>
    %114 = vector.extract_strided_slice %111 {offsets = [0, 64], sizes = [2, 32], strides = [1, 1]} : vector<2x128xf32> to vector<2x32xf32>
    %cst_37 = arith.constant 2.000000e+00 : f32
    %115 = vector.broadcast %cst_37 : f32 to vector<2x32xf32>
    %116 = arith.mulf %115, %114 : vector<2x32xf32>
    %cst_38 = arith.constant 1.000000e+00 : f32
    %117 = vector.broadcast %cst_38 : f32 to vector<2x32xf32>
    %118 = arith.subf %116, %117 : vector<2x32xf32>
    %119 = vector.extract_strided_slice %111 {offsets = [0, 96], sizes = [2, 32], strides = [1, 1]} : vector<2x128xf32> to vector<2x32xf32>
    %120 = arith.mulf %113, %89 : vector<2x32xf32>
    %121 = arith.mulf %112, %118 : vector<2x32xf32>
    %122 = arith.addf %120, %121 : vector<2x32xf32>
    %cst_39 = arith.constant 2.000000e+00 : f32
    %123 = vector.broadcast %cst_39 : f32 to vector<2x32xf32>
    %124 = arith.mulf %123, %122 : vector<2x32xf32>
    %125 = arith.negf %124 : vector<2x32xf32>
    %126 = math.exp %125 : vector<2x32xf32>
    %cst_40 = arith.constant 1.000000e+00 : f32
    %127 = vector.broadcast %cst_40 : f32 to vector<2x32xf32>
    %128 = arith.addf %127, %126 : vector<2x32xf32>
    %129 = arith.divf %127, %128 : vector<2x32xf32>
    %cst_41 = arith.constant 2.000000e+00 : f32
    %130 = vector.broadcast %cst_41 : f32 to vector<2x32xf32>
    %131 = arith.mulf %130, %129 : vector<2x32xf32>
    %cst_42 = arith.constant 1.000000e+00 : f32
    %132 = vector.broadcast %cst_42 : f32 to vector<2x32xf32>
    %133 = arith.subf %131, %132 : vector<2x32xf32>
    %134 = arith.mulf %119, %133 : vector<2x32xf32>
    %c4 = arith.constant 4 : index
    %c0_43 = arith.constant 0 : index
    %c0_44 = arith.constant 0 : index
    %135 = vector.load %arg1[%c4, %c0_43, %c0_44] : memref<8x2x128xf32, #tpu.memory_space<vmem>>, vector<1x2x128xf32>
    %136 = vector.shape_cast %135 : vector<1x2x128xf32> to vector<2x128xf32>
    %137 = arith.truncf %134 : vector<2x32xf32> to vector<2x32xbf16>
    %cst_45 = arith.constant dense<0.000000e+00> : vector<2x128xf32>
    %138 = tpu.matmul %137, %0, %cst_45 {dimension_numbers = #tpu.dot_dimension_numbers<[1], [0], [0], [1], [0, 0, 1, 1], [], []>} : vector<2x32xbf16>, vector<32x128xbf16>, vector<2x128xf32> -> vector<2x128xf32>
    %139 = arith.addf %136, %138 : vector<2x128xf32>
    %140 = arith.negf %139 : vector<2x128xf32>
    %141 = math.exp %140 : vector<2x128xf32>
    %cst_46 = arith.constant 1.000000e+00 : f32
    %142 = vector.broadcast %cst_46 : f32 to vector<2x128xf32>
    %143 = arith.addf %142, %141 : vector<2x128xf32>
    %144 = arith.divf %142, %143 : vector<2x128xf32>
    %145 = vector.extract_strided_slice %144 {offsets = [0, 0], sizes = [2, 32], strides = [1, 1]} : vector<2x128xf32> to vector<2x32xf32>
    %146 = vector.extract_strided_slice %144 {offsets = [0, 32], sizes = [2, 32], strides = [1, 1]} : vector<2x128xf32> to vector<2x32xf32>
    %147 = vector.extract_strided_slice %144 {offsets = [0, 64], sizes = [2, 32], strides = [1, 1]} : vector<2x128xf32> to vector<2x32xf32>
    %cst_47 = arith.constant 2.000000e+00 : f32
    %148 = vector.broadcast %cst_47 : f32 to vector<2x32xf32>
    %149 = arith.mulf %148, %147 : vector<2x32xf32>
    %cst_48 = arith.constant 1.000000e+00 : f32
    %150 = vector.broadcast %cst_48 : f32 to vector<2x32xf32>
    %151 = arith.subf %149, %150 : vector<2x32xf32>
    %152 = vector.extract_strided_slice %144 {offsets = [0, 96], sizes = [2, 32], strides = [1, 1]} : vector<2x128xf32> to vector<2x32xf32>
    %153 = arith.mulf %146, %122 : vector<2x32xf32>
    %154 = arith.mulf %145, %151 : vector<2x32xf32>
    %155 = arith.addf %153, %154 : vector<2x32xf32>
    %cst_49 = arith.constant 2.000000e+00 : f32
    %156 = vector.broadcast %cst_49 : f32 to vector<2x32xf32>
    %157 = arith.mulf %156, %155 : vector<2x32xf32>
    %158 = arith.negf %157 : vector<2x32xf32>
    %159 = math.exp %158 : vector<2x32xf32>
    %cst_50 = arith.constant 1.000000e+00 : f32
    %160 = vector.broadcast %cst_50 : f32 to vector<2x32xf32>
    %161 = arith.addf %160, %159 : vector<2x32xf32>
    %162 = arith.divf %160, %161 : vector<2x32xf32>
    %cst_51 = arith.constant 2.000000e+00 : f32
    %163 = vector.broadcast %cst_51 : f32 to vector<2x32xf32>
    %164 = arith.mulf %163, %162 : vector<2x32xf32>
    %cst_52 = arith.constant 1.000000e+00 : f32
    %165 = vector.broadcast %cst_52 : f32 to vector<2x32xf32>
    %166 = arith.subf %164, %165 : vector<2x32xf32>
    %167 = arith.mulf %152, %166 : vector<2x32xf32>
    %c5 = arith.constant 5 : index
    %c0_53 = arith.constant 0 : index
    %c0_54 = arith.constant 0 : index
    %168 = vector.load %arg1[%c5, %c0_53, %c0_54] : memref<8x2x128xf32, #tpu.memory_space<vmem>>, vector<1x2x128xf32>
    %169 = vector.shape_cast %168 : vector<1x2x128xf32> to vector<2x128xf32>
    %170 = arith.truncf %167 : vector<2x32xf32> to vector<2x32xbf16>
    %cst_55 = arith.constant dense<0.000000e+00> : vector<2x128xf32>
    %171 = tpu.matmul %170, %0, %cst_55 {dimension_numbers = #tpu.dot_dimension_numbers<[1], [0], [0], [1], [0, 0, 1, 1], [], []>} : vector<2x32xbf16>, vector<32x128xbf16>, vector<2x128xf32> -> vector<2x128xf32>
    %172 = arith.addf %169, %171 : vector<2x128xf32>
    %173 = arith.negf %172 : vector<2x128xf32>
    %174 = math.exp %173 : vector<2x128xf32>
    %cst_56 = arith.constant 1.000000e+00 : f32
    %175 = vector.broadcast %cst_56 : f32 to vector<2x128xf32>
    %176 = arith.addf %175, %174 : vector<2x128xf32>
    %177 = arith.divf %175, %176 : vector<2x128xf32>
    %178 = vector.extract_strided_slice %177 {offsets = [0, 0], sizes = [2, 32], strides = [1, 1]} : vector<2x128xf32> to vector<2x32xf32>
    %179 = vector.extract_strided_slice %177 {offsets = [0, 32], sizes = [2, 32], strides = [1, 1]} : vector<2x128xf32> to vector<2x32xf32>
    %180 = vector.extract_strided_slice %177 {offsets = [0, 64], sizes = [2, 32], strides = [1, 1]} : vector<2x128xf32> to vector<2x32xf32>
    %cst_57 = arith.constant 2.000000e+00 : f32
    %181 = vector.broadcast %cst_57 : f32 to vector<2x32xf32>
    %182 = arith.mulf %181, %180 : vector<2x32xf32>
    %cst_58 = arith.constant 1.000000e+00 : f32
    %183 = vector.broadcast %cst_58 : f32 to vector<2x32xf32>
    %184 = arith.subf %182, %183 : vector<2x32xf32>
    %185 = vector.extract_strided_slice %177 {offsets = [0, 96], sizes = [2, 32], strides = [1, 1]} : vector<2x128xf32> to vector<2x32xf32>
    %186 = arith.mulf %179, %155 : vector<2x32xf32>
    %187 = arith.mulf %178, %184 : vector<2x32xf32>
    %188 = arith.addf %186, %187 : vector<2x32xf32>
    %cst_59 = arith.constant 2.000000e+00 : f32
    %189 = vector.broadcast %cst_59 : f32 to vector<2x32xf32>
    %190 = arith.mulf %189, %188 : vector<2x32xf32>
    %191 = arith.negf %190 : vector<2x32xf32>
    %192 = math.exp %191 : vector<2x32xf32>
    %cst_60 = arith.constant 1.000000e+00 : f32
    %193 = vector.broadcast %cst_60 : f32 to vector<2x32xf32>
    %194 = arith.addf %193, %192 : vector<2x32xf32>
    %195 = arith.divf %193, %194 : vector<2x32xf32>
    %cst_61 = arith.constant 2.000000e+00 : f32
    %196 = vector.broadcast %cst_61 : f32 to vector<2x32xf32>
    %197 = arith.mulf %196, %195 : vector<2x32xf32>
    %cst_62 = arith.constant 1.000000e+00 : f32
    %198 = vector.broadcast %cst_62 : f32 to vector<2x32xf32>
    %199 = arith.subf %197, %198 : vector<2x32xf32>
    %200 = arith.mulf %185, %199 : vector<2x32xf32>
    %c6 = arith.constant 6 : index
    %c0_63 = arith.constant 0 : index
    %c0_64 = arith.constant 0 : index
    %201 = vector.load %arg1[%c6, %c0_63, %c0_64] : memref<8x2x128xf32, #tpu.memory_space<vmem>>, vector<1x2x128xf32>
    %202 = vector.shape_cast %201 : vector<1x2x128xf32> to vector<2x128xf32>
    %203 = arith.truncf %200 : vector<2x32xf32> to vector<2x32xbf16>
    %cst_65 = arith.constant dense<0.000000e+00> : vector<2x128xf32>
    %204 = tpu.matmul %203, %0, %cst_65 {dimension_numbers = #tpu.dot_dimension_numbers<[1], [0], [0], [1], [0, 0, 1, 1], [], []>} : vector<2x32xbf16>, vector<32x128xbf16>, vector<2x128xf32> -> vector<2x128xf32>
    %205 = arith.addf %202, %204 : vector<2x128xf32>
    %206 = arith.negf %205 : vector<2x128xf32>
    %207 = math.exp %206 : vector<2x128xf32>
    %cst_66 = arith.constant 1.000000e+00 : f32
    %208 = vector.broadcast %cst_66 : f32 to vector<2x128xf32>
    %209 = arith.addf %208, %207 : vector<2x128xf32>
    %210 = arith.divf %208, %209 : vector<2x128xf32>
    %211 = vector.extract_strided_slice %210 {offsets = [0, 0], sizes = [2, 32], strides = [1, 1]} : vector<2x128xf32> to vector<2x32xf32>
    %212 = vector.extract_strided_slice %210 {offsets = [0, 32], sizes = [2, 32], strides = [1, 1]} : vector<2x128xf32> to vector<2x32xf32>
    %213 = vector.extract_strided_slice %210 {offsets = [0, 64], sizes = [2, 32], strides = [1, 1]} : vector<2x128xf32> to vector<2x32xf32>
    %cst_67 = arith.constant 2.000000e+00 : f32
    %214 = vector.broadcast %cst_67 : f32 to vector<2x32xf32>
    %215 = arith.mulf %214, %213 : vector<2x32xf32>
    %cst_68 = arith.constant 1.000000e+00 : f32
    %216 = vector.broadcast %cst_68 : f32 to vector<2x32xf32>
    %217 = arith.subf %215, %216 : vector<2x32xf32>
    %218 = vector.extract_strided_slice %210 {offsets = [0, 96], sizes = [2, 32], strides = [1, 1]} : vector<2x128xf32> to vector<2x32xf32>
    %219 = arith.mulf %212, %188 : vector<2x32xf32>
    %220 = arith.mulf %211, %217 : vector<2x32xf32>
    %221 = arith.addf %219, %220 : vector<2x32xf32>
    %cst_69 = arith.constant 2.000000e+00 : f32
    %222 = vector.broadcast %cst_69 : f32 to vector<2x32xf32>
    %223 = arith.mulf %222, %221 : vector<2x32xf32>
    %224 = arith.negf %223 : vector<2x32xf32>
    %225 = math.exp %224 : vector<2x32xf32>
    %cst_70 = arith.constant 1.000000e+00 : f32
    %226 = vector.broadcast %cst_70 : f32 to vector<2x32xf32>
    %227 = arith.addf %226, %225 : vector<2x32xf32>
    %228 = arith.divf %226, %227 : vector<2x32xf32>
    %cst_71 = arith.constant 2.000000e+00 : f32
    %229 = vector.broadcast %cst_71 : f32 to vector<2x32xf32>
    %230 = arith.mulf %229, %228 : vector<2x32xf32>
    %cst_72 = arith.constant 1.000000e+00 : f32
    %231 = vector.broadcast %cst_72 : f32 to vector<2x32xf32>
    %232 = arith.subf %230, %231 : vector<2x32xf32>
    %233 = arith.mulf %218, %232 : vector<2x32xf32>
    %c7 = arith.constant 7 : index
    %c0_73 = arith.constant 0 : index
    %c0_74 = arith.constant 0 : index
    %234 = vector.load %arg1[%c7, %c0_73, %c0_74] : memref<8x2x128xf32, #tpu.memory_space<vmem>>, vector<1x2x128xf32>
    %235 = vector.shape_cast %234 : vector<1x2x128xf32> to vector<2x128xf32>
    %236 = arith.truncf %233 : vector<2x32xf32> to vector<2x32xbf16>
    %cst_75 = arith.constant dense<0.000000e+00> : vector<2x128xf32>
    %237 = tpu.matmul %236, %0, %cst_75 {dimension_numbers = #tpu.dot_dimension_numbers<[1], [0], [0], [1], [0, 0, 1, 1], [], []>} : vector<2x32xbf16>, vector<32x128xbf16>, vector<2x128xf32> -> vector<2x128xf32>
    %238 = arith.addf %235, %237 : vector<2x128xf32>
    %239 = arith.negf %238 : vector<2x128xf32>
    %240 = math.exp %239 : vector<2x128xf32>
    %cst_76 = arith.constant 1.000000e+00 : f32
    %241 = vector.broadcast %cst_76 : f32 to vector<2x128xf32>
    %242 = arith.addf %241, %240 : vector<2x128xf32>
    %243 = arith.divf %241, %242 : vector<2x128xf32>
    %244 = vector.extract_strided_slice %243 {offsets = [0, 0], sizes = [2, 32], strides = [1, 1]} : vector<2x128xf32> to vector<2x32xf32>
    %245 = vector.extract_strided_slice %243 {offsets = [0, 32], sizes = [2, 32], strides = [1, 1]} : vector<2x128xf32> to vector<2x32xf32>
    %246 = vector.extract_strided_slice %243 {offsets = [0, 64], sizes = [2, 32], strides = [1, 1]} : vector<2x128xf32> to vector<2x32xf32>
    %cst_77 = arith.constant 2.000000e+00 : f32
    %247 = vector.broadcast %cst_77 : f32 to vector<2x32xf32>
    %248 = arith.mulf %247, %246 : vector<2x32xf32>
    %cst_78 = arith.constant 1.000000e+00 : f32
    %249 = vector.broadcast %cst_78 : f32 to vector<2x32xf32>
    %250 = arith.subf %248, %249 : vector<2x32xf32>
    %251 = vector.extract_strided_slice %243 {offsets = [0, 96], sizes = [2, 32], strides = [1, 1]} : vector<2x128xf32> to vector<2x32xf32>
    %252 = arith.mulf %245, %221 : vector<2x32xf32>
    %253 = arith.mulf %244, %250 : vector<2x32xf32>
    %254 = arith.addf %252, %253 : vector<2x32xf32>
    %cst_79 = arith.constant 2.000000e+00 : f32
    %255 = vector.broadcast %cst_79 : f32 to vector<2x32xf32>
    %256 = arith.mulf %255, %254 : vector<2x32xf32>
    %257 = arith.negf %256 : vector<2x32xf32>
    %258 = math.exp %257 : vector<2x32xf32>
    %cst_80 = arith.constant 1.000000e+00 : f32
    %259 = vector.broadcast %cst_80 : f32 to vector<2x32xf32>
    %260 = arith.addf %259, %258 : vector<2x32xf32>
    %261 = arith.divf %259, %260 : vector<2x32xf32>
    %cst_81 = arith.constant 2.000000e+00 : f32
    %262 = vector.broadcast %cst_81 : f32 to vector<2x32xf32>
    %263 = arith.mulf %262, %261 : vector<2x32xf32>
    %cst_82 = arith.constant 1.000000e+00 : f32
    %264 = vector.broadcast %cst_82 : f32 to vector<2x32xf32>
    %265 = arith.subf %263, %264 : vector<2x32xf32>
    %266 = arith.mulf %251, %265 : vector<2x32xf32>
    %c0_83 = arith.constant 0 : index
    %c0_84 = arith.constant 0 : index
    %267 = vector.load %arg3[%c0_83, %c0_84] : memref<32x4xf32, #tpu.memory_space<vmem>>, vector<32x4xf32>
    %cst_85 = arith.constant dense<0.000000e+00> : vector<2x4xf32>
    %268 = tpu.matmul %266, %267, %cst_85 {dimension_numbers = #tpu.dot_dimension_numbers<[1], [0], [0], [1], [0, 0, 1, 1], [], []>} : vector<2x32xf32>, vector<32x4xf32>, vector<2x4xf32> -> vector<2x4xf32>
    %c0_86 = arith.constant 0 : index
    %c0_87 = arith.constant 0 : index
    %269 = vector.load %arg4[%c0_86, %c0_87] : memref<1x4xf32, #tpu.memory_space<vmem>>, vector<1x4xf32>
    %270 = vector.broadcast %269 : vector<1x4xf32> to vector<2x4xf32>
    %271 = arith.addf %268, %270 : vector<2x4xf32>
    %c0_88 = arith.constant 0 : index
    %c0_89 = arith.constant 0 : index
    %272 = vector.load %arg5[%c0_88, %c0_89] : memref<2x4xf32, #tpu.memory_space<vmem>>, vector<2x4xf32>
    tpu.vector_store %arg5[%c0_88, %c0_89], %271 {strides = array<i32>} : memref<2x4xf32, #tpu.memory_space<vmem>>, vector<2x4xf32>,
    return
  }
  func.func @transform_0(%arg0: i32) -> (i32, i32, i32) {
    %c0_i32 = arith.constant 0 : i32
    %c0_i32_0 = arith.constant 0 : i32
    %c0_i32_1 = arith.constant 0 : i32
    %c0_i32_2 = arith.constant 0 : i32
    return %c0_i32, %c0_i32_0, %c0_i32_1 : i32, i32, i32
  }
  func.func @transform_1(%arg0: i32) -> (i32, i32) {
    %c0_i32 = arith.constant 0 : i32
    %c0_i32_0 = arith.constant 0 : i32
    %c0_i32_1 = arith.constant 0 : i32
    return %c0_i32, %c0_i32_0 : i32, i32
  }
  func.func @transform_2(%arg0: i32) -> (i32, i32) {
    %c0_i32 = arith.constant 0 : i32
    %c0_i32_0 = arith.constant 0 : i32
    %c0_i32_1 = arith.constant 0 : i32
    return %c0_i32, %c0_i32_0 : i32, i32
  }
  func.func @transform_3(%arg0: i32) -> (i32, i32) {
    %c0_i32 = arith.constant 0 : i32
    %c0_i32_0 = arith.constant 0 : i32
    %c0_i32_1 = arith.constant 0 : i32
    return %c0_i32, %c0_i32_0 : i32, i32
  }
  func.func @transform_4(%arg0: i32) -> (i32, i32) {
    %c0_i32 = arith.constant 0 : i32
    %c0_i32_0 = arith.constant 0 : i32
    %c0_i32_1 = arith.constant 0 : i32
    return %c0_i32, %c0_i32_0 : i32, i32
  }
}

</mosaic_0001>

<bundles_post_ra>
// kernel: gesture_lstm_forward.1
= control target key start
LH: loop header
LB: loop body
LE: loop exit
PB: predicated region body
PF: predicated region fallthrough
CT: control target
= control target key end

     0   :  { %v1054_v1 = vmov 0.0   ;;  %vm1055_vm0 = vmmov 0   ;;  %s1237_s0 = inlined_call_operand.vmem [shape: f32[8,2,128], index: 0, kind: input, shape index: {}]   ;;  %s1238_s1 = inlined_call_operand.vmem [shape: bf16[32,128], index: 1, kind: input, shape index: {}]   ;;  %s1239_s2 = inlined_call_operand.vmem [shape: f32[32,4], index: 2, kind: input, shape index: {}]   ;;  %s1240_s3 = inlined_call_operand.vmem [shape: f32[1,4], index: 3, kind: input, shape index: {}]   ;;  %s1241_s4 = inlined_call_operand.hbm [shape: f32[2,4], index: 4, kind: output, shape index: {}]  }
   0x1   :  { %v1089_v0 = vld [vmem:[%s1238_s1] sm:$0xff]   ;;  %876 = vmatprep.subr.bf16.mxu0 %v1054_v1  ;;  %884 = vmatprep.subr.bf16.mxu1 %v1054_v1  ;;  %v1097_v2 = vld [vmem:[%s1238_s1 + $0x8] sm:$0xff]  }
   0x2   :  { %877 = vmatpush3.bf16.msra.mxu0 %v1089_v0  ;;  %880 = vmatprep.mubr.msk.bf16.mxu0 %vm1055_vm0, %v1054_v1 }
   0x3   :  { %9 = vsyncpa [#allocation3], 0  ;;  %878 = vmatprep.subr.bf16.mxu0 %v1054_v1  ;;  %885 = vmatpush3.bf16.msra.mxu1 %v1089_v0  ;;  %v1056_v3 = vmov 0   ;;  %v23_v4 = vld [vmem:[%s1237_s0] sm:$0x3]  ;;  %s1057_s20 = smov 64  }
   0x4   :  { %886 = vmatprep.subr.bf16.mxu1 %v1054_v1  ;;  %888 = vmatprep.mubr.msk.bf16.mxu1 %vm1055_vm0, %v1054_v1  ;;  %s1058_s21 = smov 32   ;;  %vm36_vm1 = vcmask 261120   ;;  %v803_v32 = vld [vmem:[%s1237_s0 + $0x2] sm:$0x3]  ;;  %v809_v60 = vld [vmem:[%s1237_s0 + $0x4] sm:$0x3] }
   0x5   :  { %vm781_vm2 = vcmask 25600  }
   0x6   :  { %879 = vmatpush3.bf16.msra.mxu0 %v1097_v2 }
   0x7   :  { %887 = vmatpush3.bf16.msra.mxu1 %v1097_v2  ;;  %892 = vmatprep.subr.bf16.mxu0 %v1054_v1 }
   0x8   :  { %900 = vmatprep.subr.bf16.mxu1 %v1054_v1 }
   0x9   :  { %881 = vmatmul.mubr.bf16.vlgmr.msra.gmra.mrb[0].mxu0 %v1056_v3 }
   0xa   :  { %893 = vmatpush3.bf16.msra.mxu0 %v1089_v0  ;;  %896 = vmatprep.mubr.msk.bf16.mxu0 %vm1055_vm0, %v1054_v1 }
   0xb   :  { %894 = vmatprep.subr.bf16.mxu0 %v1054_v1 }
   0xe   :  { %895 = vmatpush3.bf16.msra.mxu0 %v1097_v2 }
   0xf   :  { %908 = vmatprep.subr.bf16.mxu0 %v1054_v1 }
  0xdc   :  { %v74_v5 = vpop.f32.mrb[0].mxu0 }
  0xdd   :  { %v80_v6 = vadd.f32 %v74_v5, %v23_v4  ;;  %v882_v7 = vpop.f32.mrb[1].mxu0 }
  0xde   :  { %v77_v8 = vpop.f32.mrb[2].mxu0 }
  0xdf   :  { %v799_v9 = vmul.f32 -1.442695, %v80_v6  ;;  %v883_v10 = vpop.f32.mrb[3].mxu0 }
  0xe1   :  { %966 = vpow2.f32 %v799_v9 }
  0xeb   :  { %v967_v11 = vpop.eup %966 }
  0xec   :  { %v84_v12 = vadd.f32 1.0, %v967_v11 }
  0xee   :  { %968 = vrcp.f32 %v84_v12 }
  0xf8   :  { %v969_v13 = vpop.eup %968 }
  0xf9   :  { %v87_v14 = vmul.f32 2.0, %v969_v13  ;;  %v89_v18 = vmul.f32 0.0, %v969_v13 }
  0xfb   :  { %v800_v15 = vadd.f32 -1.0, %v87_v14 }
  0xfd   :  { %91 = vrot.lane.b32.xlu0 %v800_v15, %s1057_s20 }
 0x16f   :  { %v92_v16 = vpop.permute.xlu0 %91 }
 0x170   :  { %v94_v17 = vmul.f32 %v969_v13, %v92_v16 }
 0x172   :  { %96 = vrot.lane.b32.xlu0 %v94_v17, %s1058_s21 }
 0x1e4   :  { %v97_v19 = vpop.permute.xlu0 %96 }
 0x1e5   :  { %v99_v20 = vadd.f32 %v97_v19, %v89_v18 }
 0x1e7   :  { %v801_v21 = vmul.f32 -2.0, %v99_v20 }
 0x1e9   :  { %v102_v22 = vmul.f32 1.442695, %v801_v21 }
 0x1eb   :  { %970 = vpow2.f32 %v102_v22 }
 0x1f5   :  { %v971_v23 = vpop.eup %970 }
 0x1f6   :  { %v104_v24 = vadd.f32 1.0, %v971_v23 }
 0x1f8   :  { %972 = vrcp.f32 %v104_v24 }
 0x202   :  { %v973_v25 = vpop.eup %972 }
 0x203   :  { %v107_v26 = vmul.f32 2.0, %v973_v25 }
 0x205   :  { %v802_v27 = vadd.f32 -1.0, %v107_v26 }
 0x207   :  { %110 = vrot.lane.b32.xlu1 %v802_v27, %s1057_s20  ;;  %v815_v27 = vld [vmem:[%s1237_s0 + $0x6] sm:$0x3] }
 0x279   :  { %v111_v28 = vpop.permute.xlu1 %110 }
 0x27a   :  { %v113_v29 = vmul.f32 %v969_v13, %v111_v28 }
 0x27c   :  { %v116_v30 = vpack.c.bf16 %v113_v29, %v113_v29 }
 0x27e   :  { %118 = vrot.lane.b32.xlu1 %v116_v30, %s1058_s21 }
 0x2f0   :  { %v119_v31 = vpop.permute.xlu1 %118 }
 0x2f1   :  { %889 = vmatmul.mubr.msk.bf16.vlgmr.msra.gmra.mrb[0].mxu1 %vm36_vm1, %v119_v31 }
 0x2f2   :  { %901 = vmatpush3.bf16.msra.mxu1 %v1089_v0  ;;  %904 = vmatprep.mubr.msk.bf16.mxu1 %vm1055_vm0, %v1054_v1 }
 0x2f3   :  { %902 = vmatprep.subr.bf16.mxu1 %v1054_v1 }
 0x2f6   :  { %903 = vmatpush3.bf16.msra.mxu1 %v1097_v2 }
 0x2f7   :  { %916 = vmatprep.subr.bf16.mxu1 %v1054_v1 }
 0x3c4   :  { %v157_v33 = vpop.f32.mrb[0].mxu1 }
 0x3c5   :  { %v163_v34 = vadd.f32 %v803_v32, %v157_v33  ;;  %v890_v35 = vpop.f32.mrb[1].mxu1 }
 0x3c6   :  { %v160_v36 = vpop.f32.mrb[2].mxu1 }
 0x3c7   :  { %v805_v37 = vmul.f32 -1.442695, %v163_v34  ;;  %v891_v38 = vpop.f32.mrb[3].mxu1 }
 0x3c9   :  { %974 = vpow2.f32 %v805_v37 }
 0x3d3   :  { %v975_v39 = vpop.eup %974 }
 0x3d4   :  { %v167_v40 = vadd.f32 1.0, %v975_v39 }
 0x3d6   :  { %976 = vrcp.f32 %v167_v40 }
 0x3e0   :  { %v977_v41 = vpop.eup %976 }
 0x3e1   :  { %v170_v42 = vmul.f32 2.0, %v977_v41  ;;  %v172_v46 = vmul.f32 %v977_v41, %v99_v20 }
 0x3e3   :  { %v806_v43 = vadd.f32 -1.0, %v170_v42 }
 0x3e5   :  { %174 = vrot.lane.b32.xlu0 %v806_v43, %s1057_s20 }
 0x457   :  { %v175_v44 = vpop.permute.xlu0 %174 }
 0x458   :  { %v177_v45 = vmul.f32 %v977_v41, %v175_v44 }
 0x45a   :  { %179 = vrot.lane.b32.xlu1 %v177_v45, %s1058_s21 }
 0x4cc   :  { %v180_v47 = vpop.permute.xlu1 %179 }
 0x4cd   :  { %v182_v48 = vadd.f32 %v180_v47, %v172_v46 }
 0x4cf   :  { %v807_v49 = vmul.f32 -2.0, %v182_v48 }
 0x4d1   :  { %v185_v50 = vmul.f32 1.442695, %v807_v49 }
 0x4d3   :  { %978 = vpow2.f32 %v185_v50 }
 0x4dd   :  { %v979_v51 = vpop.eup %978 }
 0x4de   :  { %v187_v52 = vadd.f32 1.0, %v979_v51 }
 0x4e0   :  { %980 = vrcp.f32 %v187_v52 }
 0x4ea   :  { %v981_v53 = vpop.eup %980 }
 0x4eb   :  { %v190_v54 = vmul.f32 2.0, %v981_v53 }
 0x4ed   :  { %v808_v55 = vadd.f32 -1.0, %v190_v54 }
 0x4ef   :  { %193 = vrot.lane.b32.xlu0 %v808_v55, %s1057_s20  ;;  %v821_v55 = vld [vmem:[%s1237_s0 + $0x8] sm:$0x3] }
 0x561   :  { %v194_v56 = vpop.permute.xlu0 %193 }
 0x562   :  { %v196_v57 = vmul.f32 %v977_v41, %v194_v56 }
 0x564   :  { %v199_v58 = vpack.c.bf16 %v196_v57, %v196_v57 }
 0x566   :  { %201 = vrot.lane.b32.xlu1 %v199_v58, %s1058_s21 }
 0x5d8   :  { %v202_v59 = vpop.permute.xlu1 %201 }
 0x5d9   :  { %897 = vmatmul.mubr.msk.bf16.vlgmr.msra.gmra.mrb[4].mxu0 %vm36_vm1, %v202_v59 }
 0x5da   :  { %909 = vmatpush3.bf16.msra.mxu0 %v1089_v0  ;;  %912 = vmatprep.mubr.msk.bf16.mxu0 %vm1055_vm0, %v1054_v1 }
 0x5db   :  { %910 = vmatprep.subr.bf16.mxu0 %v1054_v1 }
 0x5de   :  { %911 = vmatpush3.bf16.msra.mxu0 %v1097_v2 }
 0x5df   :  { %924 = vmatprep.subr.bf16.mxu0 %v1054_v1 }
 0x6ac   :  { %v240_v61 = vpop.f32.mrb[4].mxu0 }
 0x6ad   :  { %v246_v62 = vadd.f32 %v809_v60, %v240_v61  ;;  %v898_v63 = vpop.f32.mrb[5].mxu0 }
 0x6ae   :  { %v243_v3 = vpop.f32.mrb[6].mxu0 }
 0x6af   :  { %v811_v4 = vmul.f32 -1.442695, %v246_v62  ;;  %v899_v5 = vpop.f32.mrb[7].mxu0 }
 0x6b1   :  { %982 = vpow2.f32 %v811_v4 }
 0x6bb   :  { %v983_v6 = vpop.eup %982 }
 0x6bc   :  { %v250_v7 = vadd.f32 1.0, %v983_v6 }
 0x6be   :  { %984 = vrcp.f32 %v250_v7 }
 0x6c8   :  { %v985_v8 = vpop.eup %984 }
 0x6c9   :  { %v253_v9 = vmul.f32 2.0, %v985_v8  ;;  %v255_v13 = vmul.f32 %v985_v8, %v182_v48 }
 0x6cb   :  { %v812_v10 = vadd.f32 -1.0, %v253_v9 }
 0x6cd   :  { %257 = vrot.lane.b32.xlu0 %v812_v10, %s1057_s20 }
 0x73f   :  { %v258_v11 = vpop.permute.xlu0 %257 }
 0x740   :  { %v260_v12 = vmul.f32 %v985_v8, %v258_v11 }
 0x742   :  { %262 = vrot.lane.b32.xlu1 %v260_v12, %s1058_s21 }
 0x7b4   :  { %v263_v14 = vpop.permute.xlu1 %262 }
 0x7b5   :  { %v265_v15 = vadd.f32 %v263_v14, %v255_v13 }
 0x7b7   :  { %v813_v16 = vmul.f32 -2.0, %v265_v15 }
 0x7b9   :  { %v268_v17 = vmul.f32 1.442695, %v813_v16 }
 0x7bb   :  { %986 = vpow2.f32 %v268_v17 }
 0x7c5   :  { %v987_v18 = vpop.eup %986 }
 0x7c6   :  { %v270_v19 = vadd.f32 1.0, %v987_v18 }
 0x7c8   :  { %988 = vrcp.f32 %v270_v19 }
 0x7d2   :  { %v989_v20 = vpop.eup %988 }
 0x7d3   :  { %v273_v21 = vmul.f32 2.0, %v989_v20 }
 0x7d5   :  { %v814_v22 = vadd.f32 -1.0, %v273_v21 }
 0x7d7   :  { %276 = vrot.lane.b32.xlu0 %v814_v22, %s1057_s20  ;;  %v827_v22 = vld [vmem:[%s1237_s0 + $0xa] sm:$0x3] }
 0x849   :  { %v277_v23 = vpop.permute.xlu0 %276 }
 0x84a   :  { %v279_v24 = vmul.f32 %v985_v8, %v277_v23 }
 0x84c   :  { %v282_v25 = vpack.c.bf16 %v279_v24, %v279_v24 }
 0x84e   :  { %284 = vrot.lane.b32.xlu1 %v282_v25, %s1058_s21 }
 0x8c0   :  { %v285_v26 = vpop.permute.xlu1 %284 }
 0x8c1   :  { %905 = vmatmul.mubr.msk.bf16.vlgmr.msra.gmra.mrb[4].mxu1 %vm36_vm1, %v285_v26 }
 0x8c2   :  { %917 = vmatpush3.bf16.msra.mxu1 %v1089_v0  ;;  %920 = vmatprep.mubr.msk.bf16.mxu1 %vm1055_vm0, %v1054_v1 }
 0x8c3   :  { %918 = vmatprep.subr.bf16.mxu1 %v1054_v1 }
 0x8c6   :  { %919 = vmatpush3.bf16.msra.mxu1 %v1097_v2 }
 0x8c7   :  { %932 = vmatprep.subr.bf16.mxu1 %v1054_v1 }
 0x994   :  { %v323_v28 = vpop.f32.mrb[4].mxu1 }
 0x995   :  { %v329_v29 = vadd.f32 %v815_v27, %v323_v28  ;;  %v906_v30 = vpop.f32.mrb[5].mxu1 }
 0x996   :  { %v326_v31 = vpop.f32.mrb[6].mxu1 }
 0x997   :  { %v817_v32 = vmul.f32 -1.442695, %v329_v29  ;;  %v907_v33 = vpop.f32.mrb[7].mxu1 }
 0x999   :  { %990 = vpow2.f32 %v817_v32 }
 0x9a3   :  { %v991_v34 = vpop.eup %990 }
 0x9a4   :  { %v333_v35 = vadd.f32 1.0, %v991_v34 }
 0x9a6   :  { %992 = vrcp.f32 %v333_v35 }
 0x9b0   :  { %v993_v36 = vpop.eup %992 }
 0x9b1   :  { %v336_v37 = vmul.f32 2.0, %v993_v36  ;;  %v338_v41 = vmul.f32 %v993_v36, %v265_v15 }
 0x9b3   :  { %v818_v38 = vadd.f32 -1.0, %v336_v37 }
 0x9b5   :  { %340 = vrot.lane.b32.xlu0 %v818_v38, %s1057_s20 }
 0xa27   :  { %v341_v39 = vpop.permute.xlu0 %340 }
 0xa28   :  { %v343_v40 = vmul.f32 %v993_v36, %v341_v39 }
 0xa2a   :  { %345 = vrot.lane.b32.xlu1 %v343_v40, %s1058_s21 }
 0xa9c   :  { %v346_v42 = vpop.permute.xlu1 %345 }
 0xa9d   :  { %v348_v43 = vadd.f32 %v346_v42, %v338_v41 }
 0xa9f   :  { %v819_v44 = vmul.f32 -2.0, %v348_v43 }
 0xaa1   :  { %v351_v45 = vmul.f32 1.442695, %v819_v44 }
 0xaa3   :  { %994 = vpow2.f32 %v351_v45 }
 0xaad   :  { %v995_v46 = vpop.eup %994 }
 0xaae   :  { %v353_v47 = vadd.f32 1.0, %v995_v46 }
 0xab0   :  { %996 = vrcp.f32 %v353_v47 }
 0xaba   :  { %v997_v48 = vpop.eup %996 }
 0xabb   :  { %v356_v49 = vmul.f32 2.0, %v997_v48  ;;  %v833_v48 = vld [vmem:[%s1237_s0 + $0xc] sm:$0x3] }
 0xabd   :  { %v820_v50 = vadd.f32 -1.0, %v356_v49 }
 0xabf   :  { %359 = vrot.lane.b32.xlu0 %v820_v50, %s1057_s20 }
 0xb31   :  { %v360_v51 = vpop.permute.xlu0 %359 }
 0xb32   :  { %v362_v52 = vmul.f32 %v993_v36, %v360_v51 }
 0xb34   :  { %v365_v53 = vpack.c.bf16 %v362_v52, %v362_v52 }
 0xb36   :  { %367 = vrot.lane.b32.xlu1 %v365_v53, %s1058_s21 }
 0xba8   :  { %v368_v54 = vpop.permute.xlu1 %367 }
 0xba9   :  { %913 = vmatmul.mubr.msk.bf16.vlgmr.msra.gmra.mrb[8].mxu0 %vm36_vm1, %v368_v54 }
 0xbaa   :  { %925 = vmatpush3.bf16.msra.mxu0 %v1089_v0  ;;  %928 = vmatprep.mubr.msk.bf16.mxu0 %vm1055_vm0, %v1054_v1 }
 0xbab   :  { %926 = vmatprep.subr.bf16.mxu0 %v1054_v1 }
 0xbae   :  { %927 = vmatpush3.bf16.msra.mxu0 %v1097_v2 }
 0xc7c   :  { %v406_v56 = vpop.f32.mrb[8].mxu0 }
 0xc7d   :  { %v412_v57 = vadd.f32 %v821_v55, %v406_v56  ;;  %v914_v58 = vpop.f32.mrb[9].mxu0 }
 0xc7e   :  { %v409_v59 = vpop.f32.mrb[10].mxu0 }
 0xc7f   :  { %v823_v60 = vmul.f32 -1.442695, %v412_v57  ;;  %v915_v61 = vpop.f32.mrb[11].mxu0 }
 0xc81   :  { %998 = vpow2.f32 %v823_v60 }
 0xc8b   :  { %v999_v62 = vpop.eup %998 }
 0xc8c   :  { %v416_v63 = vadd.f32 1.0, %v999_v62 }
 0xc8e   :  { %1000 = vrcp.f32 %v416_v63 }
 0xc98   :  { %v1001_v3 = vpop.eup %1000 }
 0xc99   :  { %v419_v4 = vmul.f32 2.0, %v1001_v3  ;;  %v421_v8 = vmul.f32 %v1001_v3, %v348_v43 }
 0xc9b   :  { %v824_v5 = vadd.f32 -1.0, %v419_v4 }
 0xc9d   :  { %423 = vrot.lane.b32.xlu0 %v824_v5, %s1057_s20 }
 0xd0f   :  { %v424_v6 = vpop.permute.xlu0 %423 }
 0xd10   :  { %v426_v7 = vmul.f32 %v1001_v3, %v424_v6 }
 0xd12   :  { %428 = vrot.lane.b32.xlu1 %v426_v7, %s1058_s21 }
 0xd84   :  { %v429_v9 = vpop.permute.xlu1 %428 }
 0xd85   :  { %v431_v10 = vadd.f32 %v429_v9, %v421_v8 }
 0xd87   :  { %v825_v11 = vmul.f32 -2.0, %v431_v10 }
 0xd89   :  { %v434_v12 = vmul.f32 1.442695, %v825_v11 }
 0xd8b   :  { %1002 = vpow2.f32 %v434_v12 }
 0xd95   :  { %v1003_v13 = vpop.eup %1002 }
 0xd96   :  { %v436_v14 = vadd.f32 1.0, %v1003_v13 }
 0xd98   :  { %1004 = vrcp.f32 %v436_v14  ;;  %v839_v14 = vld [vmem:[%s1237_s0 + $0xe] sm:$0x3] }
 0xda2   :  { %v1005_v15 = vpop.eup %1004 }
 0xda3   :  { %v439_v16 = vmul.f32 2.0, %v1005_v15 }
 0xda5   :  { %v826_v17 = vadd.f32 -1.0, %v439_v16 }
 0xda7   :  { %442 = vrot.lane.b32.xlu0 %v826_v17, %s1057_s20 }
 0xe19   :  { %v443_v18 = vpop.permute.xlu0 %442 }
 0xe1a   :  { %v445_v19 = vmul.f32 %v1001_v3, %v443_v18 }
 0xe1c   :  { %v448_v20 = vpack.c.bf16 %v445_v19, %v445_v19 }
 0xe1e   :  { %450 = vrot.lane.b32.xlu1 %v448_v20, %s1058_s21 }
 0xe90   :  { %v451_v21 = vpop.permute.xlu1 %450 }
 0xe91   :  { %921 = vmatmul.mubr.msk.bf16.vlgmr.msra.gmra.mrb[8].mxu1 %vm36_vm1, %v451_v21 }
 0xe92   :  { %933 = vmatpush3.bf16.msra.mxu1 %v1089_v0  ;;  %936 = vmatprep.mubr.msk.bf16.mxu1 %vm1055_vm0, %v1054_v1 }
 0xe93   :  { %934 = vmatprep.subr.bf16.mxu1 %v1054_v1 }
 0xe96   :  { %935 = vmatpush3.bf16.msra.mxu1 %v1097_v2 }
 0xf64   :  { %v489_v23 = vpop.f32.mrb[8].mxu1 }
 0xf65   :  { %v495_v24 = vadd.f32 %v827_v22, %v489_v23  ;;  %v922_v25 = vpop.f32.mrb[9].mxu1 }
 0xf66   :  { %v492_v26 = vpop.f32.mrb[10].mxu1 }
 0xf67   :  { %v829_v27 = vmul.f32 -1.442695, %v495_v24  ;;  %v923_v28 = vpop.f32.mrb[11].mxu1 }
 0xf69   :  { %1006 = vpow2.f32 %v829_v27 }
 0xf73   :  { %v1007_v29 = vpop.eup %1006 }
 0xf74   :  { %v499_v0 = vadd.f32 1.0, %v1007_v29 }
 0xf76   :  { %1008 = vrcp.f32 %v499_v0 }
 0xf80   :  { %v1009_v30 = vpop.eup %1008 }
 0xf81   :  { %v502_v31 = vmul.f32 2.0, %v1009_v30  ;;  %v504_v34 = vmul.f32 %v1009_v30, %v431_v10 }
 0xf83   :  { %v830_v32 = vadd.f32 -1.0, %v502_v31 }
 0xf85   :  { %506 = vrot.lane.b32.xlu0 %v830_v32, %s1057_s20 }
 0xff7   :  { %v507_v2 = vpop.permute.xlu0 %506 }
 0xff8   :  { %v509_v33 = vmul.f32 %v1009_v30, %v507_v2 }
 0xffa   :  { %511 = vrot.lane.b32.xlu1 %v509_v33, %s1058_s21  ;;  %v695_v33 = vld [vmem:[%s1239_s2] sm:$0xff] }
0x106c   :  { %v512_v35 = vpop.permute.xlu1 %511 }
0x106d   :  { %v514_v36 = vadd.f32 %v512_v35, %v504_v34  ;;  %v696_v34 = vld [vmem:[%s1239_s2 + $0x8] sm:$0xff]  ;;  %v697_v35 = vld [vmem:[%s1239_s2 + $0x10] sm:$0xff] }
0x106f   :  { %v831_v37 = vmul.f32 -2.0, %v514_v36 }
0x1071   :  { %v517_v38 = vmul.f32 1.442695, %v831_v37  ;;  %v952_v37 = vpack.c.bf16 %v696_v34, %v695_v33 }
0x1073   :  { %1010 = vpow2.f32 %v517_v38  ;;  %v698_v38 = vld [vmem:[%s1239_s2 + $0x18] sm:$0xff]  ;;  %s1060_s2 = smov [#allocation2]  }
0x1074   :  { %s789_s1 = sshll.u32 %s1060_s2, 4  ;;  %s790_s1 = int_to_ptr.vmem [resolvable:$true] %s789_s1 }
0x1075   :  { %s1030_s19 = scalar_lea.vmem %s790_s1, 32  ;;  %p1035_p1 = scmp.lt.s32.totalorder %s790_s1, %s790_s1 }
0x1076   :  { %p1031_p0 = scmp.ne.s32.totalorder %s790_s1, %s1030_s19  ;;  %p1036_p2 = scmp.lt.s32.totalorder %s1030_s19, %s1030_s19 }
0x1078   :  { %p1037_p3 = por %p1036_p2, %p1035_p1 }
0x107a   :  { %p1038_p4 = pnand %p1037_p3, %p1031_p0 }
0x107d   :  { %v1011_v39 = vpop.eup %1010 }
0x107e   :  { %v519_v40 = vadd.f32 1.0, %v1011_v39  ;;  %v955_v39 = vpack.c.bf16 %v698_v38, %v697_v35 }
0x1080   :  { %1012 = vrcp.f32 %v519_v40 }
0x108a   :  { %v1013_v41 = vpop.eup %1012 }
0x108b   :  { %v522_v42 = vmul.f32 2.0, %v1013_v41 }
0x108d   :  { %v832_v43 = vadd.f32 -1.0, %v522_v42 }
0x108f   :  { %525 = vrot.lane.b32.xlu0 %v832_v43, %s1057_s20 }
0x1101   :  { %v526_v44 = vpop.permute.xlu0 %525 }
0x1102   :  { %v528_v45 = vmul.f32 %v1009_v30, %v526_v44 }
0x1104   :  { %v531_v46 = vpack.c.bf16 %v528_v45, %v528_v45 }
0x1106   :  { %533 = vrot.lane.b32.xlu1 %v531_v46, %s1058_s21  ;;  %v845_v46 = vld [vmem:[%s1240_s3] ss:$0 sm:$0xff] }
0x1178   :  { %v534_v47 = vpop.permute.xlu1 %533 }
0x1179   :  { %929 = vmatmul.mubr.msk.bf16.vlgmr.msra.gmra.mrb[12].mxu0 %vm36_vm1, %v534_v47 }
0x117a   :  { %948 = vmatprep.mubr.msk.f32.mxu0 %vm1055_vm0, %v1054_v1 }
0x124c   :  { %v572_v49 = vpop.f32.mrb[12].mxu0 }
0x124d   :  { %v578_v50 = vadd.f32 %v833_v48, %v572_v49  ;;  %v930_v51 = vpop.f32.mrb[13].mxu0 }
0x124e   :  { %v575_v52 = vpop.f32.mrb[14].mxu0 }
0x124f   :  { %v835_v53 = vmul.f32 -1.442695, %v578_v50  ;;  %v931_v54 = vpop.f32.mrb[15].mxu0 }
0x1251   :  { %1014 = vpow2.f32 %v835_v53 }
0x125b   :  { %v1015_v55 = vpop.eup %1014 }
0x125c   :  { %v582_v56 = vadd.f32 1.0, %v1015_v55 }
0x125e   :  { %1016 = vrcp.f32 %v582_v56 }
0x1268   :  { %v1017_v57 = vpop.eup %1016 }
0x1269   :  { %v585_v58 = vmul.f32 2.0, %v1017_v57  ;;  %v587_v61 = vmul.f32 %v1017_v57, %v514_v36  ;;  %v1059_v36 = vmov 0.0|0.0  }
0x126a   :  { %951 = vmatprep.subr.bf16.mxu0 %v1059_v36 }
0x126b   :  { %v836_v59 = vadd.f32 -1.0, %v585_v58  ;;  %953 = vmatpush3.bf16.msra.mxu0 %v952_v37 }
0x126c   :  { %954 = vmatprep.subr.bf16.mxu0 %v1059_v36 }
0x126d   :  { %589 = vrot.lane.b32.xlu0 %v836_v59, %s1057_s20 }
0x126f   :  { %956 = vmatpush3.bf16.msra.mxu0 %v955_v39 }
0x12df   :  { %v590_v1 = vpop.permute.xlu0 %589 }
0x12e0   :  { %v592_v60 = vmul.f32 %v1017_v57, %v590_v1 }
0x12e2   :  { %594 = vrot.lane.b32.xlu1 %v592_v60, %s1058_s21 }
0x1354   :  { %v595_v62 = vpop.permute.xlu1 %594 }
0x1355   :  { %v597_v63 = vadd.f32 %v595_v62, %v587_v61 }
0x1357   :  { %v837_v3 = vmul.f32 -2.0, %v597_v63 }
0x1359   :  { %v600_v4 = vmul.f32 1.442695, %v837_v3 }
0x135b   :  { %1018 = vpow2.f32 %v600_v4 }
0x1365   :  { %v1019_v5 = vpop.eup %1018 }
0x1366   :  { %v602_v6 = vadd.f32 1.0, %v1019_v5 }
0x1368   :  { %1020 = vrcp.f32 %v602_v6 }
0x1372   :  { %v1021_v7 = vpop.eup %1020 }
0x1373   :  { %v605_v8 = vmul.f32 2.0, %v1021_v7 }
0x1375   :  { %v838_v9 = vadd.f32 -1.0, %v605_v8 }
0x1377   :  { %608 = vrot.lane.b32.xlu0 %v838_v9, %s1057_s20 }
0x13e9   :  { %v609_v10 = vpop.permute.xlu0 %608 }
0x13ea   :  { %v611_v11 = vmul.f32 %v1017_v57, %v609_v10 }
0x13ec   :  { %v614_v12 = vpack.c.bf16 %v611_v11, %v611_v11 }
0x13ee   :  { %616 = vrot.lane.b32.xlu1 %v614_v12, %s1058_s21 }
0x1460   :  { %v617_v13 = vpop.permute.xlu1 %616 }
0x1461   :  { %937 = vmatmul.mubr.msk.bf16.vlgmr.msra.gmra.mrb[12].mxu1 %vm36_vm1, %v617_v13 }
0x1534   :  { %v655_v15 = vpop.f32.mrb[12].mxu1 }
0x1535   :  { %v661_v16 = vadd.f32 %v839_v14, %v655_v15  ;;  %v938_v17 = vpop.f32.mrb[13].mxu1 }
0x1536   :  { %v658_v18 = vpop.f32.mrb[14].mxu1 }
0x1537   :  { %v841_v19 = vmul.f32 -1.442695, %v661_v16  ;;  %v939_v20 = vpop.f32.mrb[15].mxu1 }
0x1539   :  { %1022 = vpow2.f32 %v841_v19 }
0x1543   :  { %v1023_v21 = vpop.eup %1022 }
0x1544   :  { %v665_v22 = vadd.f32 1.0, %v1023_v21 }
0x1546   :  { %1024 = vrcp.f32 %v665_v22 }
0x1550   :  { %v1025_v23 = vpop.eup %1024 }
0x1551   :  { %v668_v24 = vmul.f32 2.0, %v1025_v23  ;;  %v670_v28 = vmul.f32 %v1025_v23, %v597_v63 }
0x1553   :  { %v842_v25 = vadd.f32 -1.0, %v668_v24 }
0x1555   :  { %672 = vrot.lane.b32.xlu0 %v842_v25, %s1057_s20 }
0x15c7   :  { %v673_v26 = vpop.permute.xlu0 %672 }
0x15c8   :  { %v675_v27 = vmul.f32 %v1025_v23, %v673_v26 }
0x15ca   :  { %677 = vrot.lane.b32.xlu1 %v675_v27, %s1058_s21 }
0x163c   :  { %v678_v29 = vpop.permute.xlu1 %677 }
0x163d   :  { %v680_v0 = vadd.f32 %v678_v29, %v670_v28 }
0x163f   :  { %v843_v30 = vmul.f32 -2.0, %v680_v0 }
0x1641   :  { %v683_v31 = vmul.f32 1.442695, %v843_v30 }
0x1643   :  { %1026 = vpow2.f32 %v683_v31 }
0x164d   :  { %v1027_v32 = vpop.eup %1026 }
0x164e   :  { %v685_v2 = vadd.f32 1.0, %v1027_v32 }
0x1650   :  { %1028 = vrcp.f32 %v685_v2 }
0x165a   :  { %v1029_v40 = vpop.eup %1028 }
0x165b   :  { %v688_v41 = vmul.f32 2.0, %v1029_v40 }
0x165d   :  { %v844_v42 = vadd.f32 -1.0, %v688_v41 }
0x165f   :  { %691 = vrot.lane.b32.xlu0 %v844_v42, %s1057_s20 }
0x16d1   :  { %v692_v43 = vpop.permute.xlu0 %691 }
0x16d2   :  { %v694_v44 = vmul.f32 %v1025_v23, %v692_v43 }
0x16d4   :  { %707 = vrot.lane.b32.xlu1 %v694_v44, %s1058_s21 }
0x1746   :  { %v708_v45 = vpop.permute.xlu1 %707 }
0x1747   :  { %949 = vmatmul.mubr.msk.f32.vlgmr.msra.gmra.mrb[16].mxu0 %vm36_vm1, %v708_v45 }
0x181a   :  { %v777_v47 = vpop.f32.mrb[16].mxu0 }
0x181b   :  { %v778_v48 = vadd.f32 %v845_v46, %v777_v47  ;;  %v950_v49 = vpop.f32.mrb[17].mxu0 }
0x181d   :  { %782 = vst.msk [vmem:[#allocation2] sm:$0x3] %vm781_vm2, %v778_v48 }
0x181e   :  { %1041 = shalt.err (!%p1038_p4)
}
0x181f   :  { %s1042_s22 = scalar_lea.hbm %s1241_s4, 32 }
0x1820   :  { %p1043_p5 = scmp.ne.s32.totalorder %s1241_s4, %s1042_s22  ;;  %p1046_p6 = scmp.lt.u32.totalorder %s1042_s22, %s1241_s4 }
0x1822   :  { %p1048_p7 = pnand %p1046_p6, %p1043_p5 }
0x1824   :  { %1051 = shalt.err (!%p1048_p7)
}
0x1825   :  { %792 = dma.vmem_to_hbm [thread:$0]  %s790_s1, 32, %s1241_s4, [#allocation3]  }
0x1826   :  { %1052 = dma.done.wait [#allocation3], 32  }
0x1827   :  { %1053 = vsyncadd [#allocation3], 4294967264 }
0x1828   :  { %796 = vsyncpa [#allocation3], 1 }

</bundles_post_ra>
